<compile_context>
chip_gen: v7x
topology: tpu7x:2x2x1
jax: 0.10.0
libtpu: 0.0.40
codegen_flags: <defaults>
</compile_context>

<pallas_src>
import functools

import jax
import jax.numpy as jnp
from jax import lax
from jax.experimental import pallas as pl
from jax.experimental.pallas import tpu as pltpu


def _round_up(x, m):
    return (x + m - 1) // m * m


def _logsigmoid(x):
    # numerically stable log(sigmoid(x)) = -log(1 + exp(-x))
    return -jnp.logaddexp(jnp.zeros_like(x), -x)


def _sigmoid(x):
    # sigmoid via EUP tanh (separate bundle slot); matches jax.nn.sigmoid to
    # ~f32 ulp but is not bit-identical.
    return 0.5 * (jnp.tanh(0.5 * x) + 1.0)


def _make_kernel(M, N, D, with_sim):
    """Kernel factory; M, N, D are the *true* (unpadded) problem sizes."""
    neg = -1e30  # finite "minus infinity" for the masked softmaxes

    def kernel(desc0_ref,   # (1, Mr, D)   rows >= M are zero padding
               desc1_ref,   # (1, Nc, D)   rows >= N are zero padding
               wf_ref,      # (D, Df)      [:, :D]=scale*final_proj.weight.T, [:, D]=matchability.weight
               bf_ref,      # (1, Df) f32  [0, :D]=scale*final_proj.bias,      [0, D]=matchability.bias
               wm_ref,      # (1, D)       matchability.weight (row), same dtype as descriptors
               *out_refs):
        if with_sim:
            scores_ref, sim_ref, scores_no_ref = out_refs   # each (1, Mr, Nc)
        else:
            scores_ref, scores_no_ref = out_refs

        x0 = desc0_ref[0]            # (Mr, D)
        x1 = desc1_ref[0]            # (Nc, D)
        wf = wf_ref[...]             # (D, Df)
        bf = bf_ref[...]             # (1, Df) f32
        wm = wm_ref[...]             # (1, D)
        mxu_dtype = x0.dtype         # bf16 or f32 (decided in the wrapper)

        Mr = x0.shape[0]
        Nc = x1.shape[0]

        # Fused projection + matchability: one MXU pass per descriptor set.
        # Scale is pre-folded into wf/bf, so h[:, :D] are already the scaled
        # projected descriptors.
        h0 = jnp.dot(x0, wf, preferred_element_type=jnp.float32) + bf   # (Mr, Df)
        h1 = jnp.dot(x1, wf, preferred_element_type=jnp.float32) + bf   # (Nc, Df)

        md0 = h0[:, :D]                  # (Mr, D)
        md1 = h1[:, :D]                  # (Nc, D)
        z0 = h0[:, D:D + 1]              # (Mr, 1) matchability logits

        # z1^T computed directly as a row-vector matmul contracting on the
        # last dims: no narrow slice, no (Nc,1)->(1,Nc) transpose.
        z1t = lax.dot_general(wm, x1, (((1,), (1,)), ((), ())),
                              preferred_element_type=jnp.float32) + bf[:, D:D + 1]   # (1, Nc)

        # sim[m, n] = <md0[m], md1[n]>; contraction on last dims -> no relayout.
        a = md0.astype(mxu_dtype)
        b = md1.astype(mxu_dtype)
        sim_w = lax.dot_general(a, b, (((1,), (1,)), ((), ())),
                                preferred_element_type=jnp.float32)      # (Mr, Nc)
        if with_sim:
            sim_ref[0] = sim_w           # single lane-dense store (padding sliced in wrapper)

        # Narrow masks (broadcast by jnp.where): (1,Nc) lane iota, (Mr,1) sublane iota.
        lane = lax.broadcasted_iota(jnp.int32, (1, Nc), 1)
        sub = lax.broadcasted_iota(jnp.int32, (Mr, 1), 0)
        valid_col = lane < N             # (1, Nc)
        valid_row = sub < M              # (Mr, 1)

        # log-softmax over n (exclude padded columns).
        sim_rm = jnp.where(valid_col, sim_w, neg)
        rmax = jnp.max(sim_rm, axis=1, keepdims=True)
        row_lse = rmax + jnp.log(jnp.sum(jnp.exp(sim_rm - rmax), axis=1, keepdims=True))

        # log-softmax over m (exclude padded rows).
        sim_cm = jnp.where(valid_row, sim_w, neg)
        cmax = jnp.max(sim_cm, axis=0, keepdims=True)
        col_lse = cmax + jnp.log(jnp.sum(jnp.exp(sim_cm - cmax), axis=0, keepdims=True))

        # Matchability certainties; logsigmoid computed once per sign via
        # log(sigmoid(-x)) = log(sigmoid(x)) - x.
        ls_z0 = _logsigmoid(z0)          # (Mr, 1)
        ls_nz0 = ls_z0 - z0              # (Mr, 1)
        ls_z1t = _logsigmoid(z1t)        # (1, Nc)
        ls_nz1t = ls_z1t - z1t           # (1, Nc)

        core = (sim_w - row_lse) + (sim_w - col_lse) + (ls_z0 + ls_z1t)   # (Mr, Nc)

        # Register-side assembly of the bordered matrix:
        #   [ core            | logsig(-z0) | pad ]
        #   [ logsig(-z1)^T   | 0           | pad ]
        #   [ pad             | pad         | pad ]
        is_border_col = lane == N        # (1, Nc)
        is_border_row = sub == M         # (Mr, 1)
        bottom = jnp.where(is_border_col, 0.0, ls_nz1t)       # (1, Nc) border row + 0 corner
        full = jnp.where(is_border_col, ls_nz0, core)          # border column
        full = jnp.where(is_border_row, bottom, full)          # border row / corner

        scores_ref[0] = full                                    # one full-tile store
        scores_no_ref[0] = _sigmoid(full)                       # one full-tile store

    return kernel


@functools.partial(jax.jit, static_argnames=("use_bf16", "with_sim"))
def match_assignment(desc0, desc1, wp, bp, wm, bm, use_bf16=False, with_sim=True):
    """desc0: (B, M, D), desc1: (B, N, D).
    wp: (D, D) torch-style (out, in); bp: (D,); wm: (1, D); bm: (1,).
    Returns (scores (B,M+1,N+1), sim (B,M,N) or None, scores_no (B,M+1,N+1))."""
    B, M, D = desc0.shape
    N = desc1.shape[1]

    Mr = _round_up(M + 1, 16 if use_bf16 else 8)   # padded rows of the bordered matrix
    Nc = _round_up(N + 1, 128)                     # padded (lane-dense) columns
    Df = _round_up(D + 1, 128)                     # fused weight output width

    scale = float(D) ** -0.25
    in_dtype = jnp.bfloat16 if use_bf16 else jnp.float32

    # Fused weight / bias with the D**-0.25 scale pre-folded into columns [0, D);
    # column D holds the (unscaled) matchability weight / bias, remainder zero.
    # TODO(synk): hoist this assembly out of the per-call wrapper when weights
    # are static across calls (precompute once, close over the padded params).
    wf = jnp.zeros((D, Df), jnp.float32)
    wf = wf.at[:, :D].set(wp.T.astype(jnp.float32) * scale)
    wf = wf.at[:, D].set(wm.reshape(D).astype(jnp.float32))
    wf = wf.astype(in_dtype)
    bf = jnp.zeros((1, Df), jnp.float32)            # bias stays f32 (post-accumulation add)
    bf = bf.at[0, :D].set(bp.astype(jnp.float32) * scale)
    bf = bf.at[0, D].set(bm.reshape(()).astype(jnp.float32))
    wm_row = wm.reshape(1, D).astype(in_dtype)

    # Zero-pad descriptors along the keypoint axes (wrapper-side dtype cast) so
    # the MXU produces the padded score tile directly; padding handled by masks.
    desc0p = jnp.pad(desc0.astype(in_dtype), ((0, 0), (0, Mr - M), (0, 0)))
    desc1p = jnp.pad(desc1.astype(in_dtype), ((0, 0), (0, Nc - N), (0, 0)))

    n_out = 3 if with_sim else 2
    out_shapes = tuple(jax.ShapeDtypeStruct((B, Mr, Nc), jnp.float32) for _ in range(n_out))
    out_specs = [pl.BlockSpec((1, Mr, Nc), lambda b: (b, 0, 0)) for _ in range(n_out)]

    # VMEM budget: double-buffered inputs/outputs plus live (Mr,Nc)/(·,Df)
    # intermediates, capped at 7/8 of physical VMEM for this chip.
    itemsize = 2 if use_bf16 else 4
    bytes_in = (Mr * D + Nc * D + D * Df + D) * itemsize + Df * 4
    bytes_out = n_out * Mr * Nc * 4
    bytes_live = 6 * Mr * Nc * 4 + 2 * (Mr + Nc) * Df * 4
    per_step = 2 * (bytes_in + bytes_out) + bytes_live
    try:
        vmem_cap = getattr(pltpu.get_tpu_info(), "vmem_capacity_bytes", 64 << 20)
    except Exception:  # pragma: no cover - conservative fallback off-TPU
        vmem_cap = 64 << 20
    vmem_limit = int(min(max(per_step + (4 << 20), 32 << 20), (vmem_cap * 7) // 8))

    grid_spec = pltpu.PrefetchScalarGridSpec(
        num_scalar_prefetch=0,
        grid=(B,),
        in_specs=[
            pl.BlockSpec((1, Mr, D), lambda b: (b, 0, 0)),
            pl.BlockSpec((1, Nc, D), lambda b: (b, 0, 0)),
            pl.BlockSpec((D, Df), lambda b: (0, 0)),
            pl.BlockSpec((1, Df), lambda b: (0, 0)),
            pl.BlockSpec((1, D), lambda b: (0, 0)),
        ],
        out_specs=out_specs,
    )

    kernel = _make_kernel(M, N, D, with_sim)
    outs = pl.pallas_call(
        kernel,
        out_shape=out_shapes,
        grid_spec=grid_spec,
        compiler_params=pltpu.CompilerParams(
            dimension_semantics=("parallel",),
            vmem_limit_bytes=vmem_limit),
    )(desc0p, desc1p, wf, bf, wm_row)

    # Slice the padding back off with XLA (cheap; keeps in-kernel stores dense).
    if with_sim:
        scores_p, sim_p, scores_no_p = outs
        sim = sim_p[:, :M, :N]
    else:
        scores_p, scores_no_p = outs
        sim = None
    scores = scores_p[:, :M + 1, :N + 1]
    scores_no = scores_no_p[:, :M + 1, :N + 1]
    return scores, sim, scores_no


def _reference(desc0, desc1, wp, bp, wm, bm):
    """Pure-JAX reference mirroring the PyTorch module (for validation)."""
    d = desc0.shape[-1]
    mdesc0 = (desc0 @ wp.T + bp) / d ** 0.25
    mdesc1 = (desc1 @ wp.T + bp) / d ** 0.25
    sim = jnp.einsum("bmd,bnd->bmn", mdesc0, mdesc1)
    z0 = desc0 @ wm.T + bm          # (B, M, 1)
    z1 = desc1 @ wm.T + bm          # (B, N, 1)
    cert = jax.nn.log_sigmoid(z0) + jnp.swapaxes(jax.nn.log_sigmoid(z1), 1, 2)
    s0 = jax.nn.log_softmax(sim, axis=2)
    s1 = jnp.swapaxes(jax.nn.log_softmax(jnp.swapaxes(sim, 1, 2), axis=2), 1, 2)
    b, m, n = sim.shape
    scores = jnp.zeros((b, m + 1, n + 1), sim.dtype)
    scores = scores.at[:, :m, :n].set(s0 + s1 + cert)
    scores = scores.at[:, :-1, -1].set(jax.nn.log_sigmoid(-z0[..., 0]))
    scores = scores.at[:, -1, :-1].set(jax.nn.log_sigmoid(-z1[..., 0]))
    return scores, sim, jax.nn.sigmoid(scores)


if __name__ == "__main__":
    key = jax.random.PRNGKey(0)
    k0, k1, k2, k3, k4, k5 = jax.random.split(key, 6)

    B, M, N, D = 2, 8, 8, 32

    desc0 = jax.random.normal(k0, (B, M, D), jnp.float32)
    desc1 = jax.random.normal(k1, (B, N, D), jnp.float32)

    # Deterministic parameter init (torch nn.Linear-style uniform bounds).
    bound = 1.0 / (D ** 0.5)
    wp = jax.random.uniform(k2, (D, D), jnp.float32, -bound, bound)   # final_proj.weight
    bp = jax.random.uniform(k3, (D,), jnp.float32, -bound, bound)     # final_proj.bias
    wm = jax.random.uniform(k4, (1, D), jnp.float32, -bound, bound)   # matchability.weight
    bm = jax.random.uniform(k5, (1,), jnp.float32, -bound, bound)     # matchability.bias

    r_scores, r_sim, r_scores_no = _reference(desc0, desc1, wp, bp, wm, bm)

    # Default (f32) path — preserves module semantics (scale folding is fp-ulp only).
    scores, sim, scores_no = match_assignment(desc0, desc1, wp, bp, wm, bm)
    jax.block_until_ready((scores, sim, scores_no))
    assert scores.shape == (B, M + 1, N + 1) and sim.shape == (B, M, N)
    assert jnp.allclose(scores, r_scores, atol=1e-4, rtol=1e-4)
    assert jnp.allclose(sim, r_sim, atol=1e-4, rtol=1e-4)
    assert jnp.allclose(scores_no, r_scores_no, atol=1e-4, rtol=1e-4)

    # sim-less path (one fewer HBM writeback / output buffer).
    s2, sim2, sn2 = match_assignment(desc0, desc1, wp, bp, wm, bm, with_sim=False)
    jax.block_until_ready((s2, sn2))
    assert sim2 is None
    assert jnp.allclose(s2, r_scores, atol=1e-4, rtol=1e-4)
    assert jnp.allclose(sn2, r_scores_no, atol=1e-4, rtol=1e-4)

    # bf16 MXU fast path (looser tolerance; operands cast wrapper-side).
    s_bf, sim_bf, sn_bf = match_assignment(desc0, desc1, wp, bp, wm, bm, use_bf16=True)
    jax.block_until_ready((s_bf, sim_bf, sn_bf))
    assert jnp.allclose(s_bf, r_scores, atol=1e-1, rtol=1e-1)
    assert jnp.allclose(sim_bf, r_sim, atol=1e-1, rtol=1e-1)
    assert jnp.allclose(sn_bf, r_scores_no, atol=1e-1, rtol=1e-1)

    print("KERNEL_OK")
</pallas_src>

<mosaic_0001>
module attributes {stable_mosaic.version = 11 : i64} {
  func.func @kernel(%arg0: i32, %arg1: memref<1x16x32xf32, #tpu.memory_space<vmem>>, %arg2: memref<1x128x32xf32, #tpu.memory_space<vmem>>, %arg3: memref<32x128xf32, #tpu.memory_space<vmem>>, %arg4: memref<1x128xf32, #tpu.memory_space<vmem>>, %arg5: memref<1x32xf32, #tpu.memory_space<vmem>>, %arg6: memref<1x16x128xf32, #tpu.memory_space<vmem>>, %arg7: memref<1x16x128xf32, #tpu.memory_space<vmem>>, %arg8: memref<1x16x128xf32, #tpu.memory_space<vmem>>) attributes {dimension_semantics = [#tpu.dimension_semantics<parallel>], iteration_bounds = array<i64: 2>, scalar_prefetch = 0 : i64, scratch_operands = 0 : i64, tpu.core_type = #tpu.core_type<tc>, window_params = [{transform_indices = @transform_0, window_bounds = array<i64: 1, 16, 32>}, {transform_indices = @transform_1, window_bounds = array<i64: 1, 128, 32>}, {pipeline_mode = #tpu.pipeline_mode<synchronous>, transform_indices = @transform_2, window_bounds = array<i64: 32, 128>}, {pipeline_mode = #tpu.pipeline_mode<synchronous>, transform_indices = @transform_3, window_bounds = array<i64: 1, 128>}, {pipeline_mode = #tpu.pipeline_mode<synchronous>, transform_indices = @transform_4, window_bounds = array<i64: 1, 32>}, {transform_indices = @transform_5, window_bounds = array<i64: 1, 16, 128>}, {transform_indices = @transform_6, window_bounds = array<i64: 1, 16, 128>}, {transform_indices = @transform_7, window_bounds = array<i64: 1, 16, 128>}]} {
    %c0 = arith.constant 0 : index
    %c0_0 = arith.constant 0 : index
    %c0_1 = arith.constant 0 : index
    %0 = vector.load %arg1[%c0, %c0_0, %c0_1] : memref<1x16x32xf32, #tpu.memory_space<vmem>>, vector<1x16x32xf32>
    %1 = vector.shape_cast %0 : vector<1x16x32xf32> to vector<16x32xf32>
    %c0_2 = arith.constant 0 : index
    %c0_3 = arith.constant 0 : index
    %c0_4 = arith.constant 0 : index
    %2 = vector.load %arg2[%c0_2, %c0_3, %c0_4] : memref<1x128x32xf32, #tpu.memory_space<vmem>>, vector<1x128x32xf32>
    %3 = vector.shape_cast %2 : vector<1x128x32xf32> to vector<128x32xf32>
    %c0_5 = arith.constant 0 : index
    %c0_6 = arith.constant 0 : index
    %4 = vector.load %arg3[%c0_5, %c0_6] : memref<32x128xf32, #tpu.memory_space<vmem>>, vector<32x128xf32>
    %c0_7 = arith.constant 0 : index
    %c0_8 = arith.constant 0 : index
    %5 = vector.load %arg4[%c0_7, %c0_8] : memref<1x128xf32, #tpu.memory_space<vmem>>, vector<1x128xf32>
    %c0_9 = arith.constant 0 : index
    %c0_10 = arith.constant 0 : index
    %6 = vector.load %arg5[%c0_9, %c0_10] : memref<1x32xf32, #tpu.memory_space<vmem>>, vector<1x32xf32>
    %cst = arith.constant dense<0.000000e+00> : vector<16x128xf32>
    %7 = tpu.matmul %1, %4, %cst {dimension_numbers = #tpu.dot_dimension_numbers<[1], [0], [0], [1], [0, 0, 1, 1], [], []>} : vector<16x32xf32>, vector<32x128xf32>, vector<16x128xf32> -> vector<16x128xf32>
    %8 = vector.broadcast %5 : vector<1x128xf32> to vector<16x128xf32>
    %9 = arith.addf %7, %8 : vector<16x128xf32>
    %cst_11 = arith.constant dense<0.000000e+00> : vector<128x128xf32>
    %10 = tpu.matmul %3, %4, %cst_11 {dimension_numbers = #tpu.dot_dimension_numbers<[1], [0], [0], [1], [0, 0, 1, 1], [], []>} : vector<128x32xf32>, vector<32x128xf32>, vector<128x128xf32> -> vector<128x128xf32>
    %11 = vector.broadcast %5 : vector<1x128xf32> to vector<128x128xf32>
    %12 = arith.addf %10, %11 : vector<128x128xf32>
    %13 = vector.extract_strided_slice %9 {offsets = [0, 0], sizes = [16, 32], strides = [1, 1]} : vector<16x128xf32> to vector<16x32xf32>
    %14 = vector.extract_strided_slice %12 {offsets = [0, 0], sizes = [128, 32], strides = [1, 1]} : vector<128x128xf32> to vector<128x32xf32>
    %15 = vector.extract_strided_slice %9 {offsets = [0, 32], sizes = [16, 1], strides = [1, 1]} : vector<16x128xf32> to vector<16x1xf32>
    %cst_12 = arith.constant dense<0.000000e+00> : vector<1x128xf32>
    %16 = tpu.matmul %6, %3, %cst_12 {dimension_numbers = #tpu.dot_dimension_numbers<[1], [1], [0], [0], [0, 0, 1, 0], [], []>} : vector<1x32xf32>, vector<128x32xf32>, vector<1x128xf32> -> vector<1x128xf32>
    %17 = vector.extract_strided_slice %5 {offsets = [0, 32], sizes = [1, 1], strides = [1, 1]} : vector<1x128xf32> to vector<1x1xf32>
    %18 = vector.broadcast %17 : vector<1x1xf32> to vector<1x128xf32>
    %19 = arith.addf %16, %18 : vector<1x128xf32>
    %cst_13 = arith.constant dense<0.000000e+00> : vector<16x128xf32>
    %20 = tpu.matmul %13, %14, %cst_13 {dimension_numbers = #tpu.dot_dimension_numbers<[1], [1], [0], [0], [0, 0, 1, 0], [], []>} : vector<16x32xf32>, vector<128x32xf32>, vector<16x128xf32> -> vector<16x128xf32>
    %c0_14 = arith.constant 0 : index
    %c0_15 = arith.constant 0 : index
    %c0_16 = arith.constant 0 : index
    %21 = vector.load %arg7[%c0_14, %c0_15, %c0_16] : memref<1x16x128xf32, #tpu.memory_space<vmem>>, vector<1x16x128xf32>
    %22 = vector.shape_cast %21 : vector<1x16x128xf32> to vector<16x128xf32>
    %23 = vector.shape_cast %20 : vector<16x128xf32> to vector<1x16x128xf32>
    tpu.vector_store %arg7[%c0_14, %c0_15, %c0_16], %23 {strides = array<i32>} : memref<1x16x128xf32, #tpu.memory_space<vmem>>, vector<1x16x128xf32>,
    %24 = tpu.iota {dimensions = array<i32: 1>} : vector<1x128xi32>
    %25 = tpu.iota {dimensions = array<i32: 0>} : vector<16x1xi32>
    %c8_i32 = arith.constant 8 : i32
    %26 = vector.broadcast %c8_i32 : i32 to vector<1x128xi32>
    %27 = arith.cmpi slt, %24, %26 : vector<1x128xi32>
    %c8_i32_17 = arith.constant 8 : i32
    %28 = vector.broadcast %c8_i32_17 : i32 to vector<16x1xi32>
    %29 = arith.cmpi slt, %25, %28 : vector<16x1xi32>
    %cst_18 = arith.constant -1.000000e+30 : f32
    %30 = vector.shape_cast %27 : vector<1x128xi1> to vector<1x128xi1>
    %31 = vector.broadcast %30 : vector<1x128xi1> to vector<16x128xi1>
    %32 = vector.broadcast %cst_18 : f32 to vector<16x128xf32>
    %33 = arith.select %31, %20, %32 : vector<16x128xi1>, vector<16x128xf32>
    %cst_19 = arith.constant dense<0xFF800000> : vector<16xf32>
    %34 = vector.multi_reduction <maximumf>, %33, %cst_19 [1] : vector<16x128xf32> to vector<16xf32>
    %35 = vector.shape_cast %34 : vector<16xf32> to vector<16x1xf32>
    %36 = vector.broadcast %35 : vector<16x1xf32> to vector<16x128xf32>
    %37 = arith.subf %33, %36 : vector<16x128xf32>
    %38 = math.exp %37 : vector<16x128xf32>
    %cst_20 = arith.constant dense<0.000000e+00> : vector<16xf32>
    %39 = vector.multi_reduction <add>, %38, %cst_20 [1] : vector<16x128xf32> to vector<16xf32>
    %40 = vector.shape_cast %39 : vector<16xf32> to vector<16x1xf32>
    %41 = math.log %40 : vector<16x1xf32>
    %42 = arith.addf %35, %41 : vector<16x1xf32>
    %cst_21 = arith.constant -1.000000e+30 : f32
    %43 = vector.shape_cast %29 : vector<16x1xi1> to vector<16x1xi1>
    %44 = vector.broadcast %43 : vector<16x1xi1> to vector<16x128xi1>
    %45 = vector.broadcast %cst_21 : f32 to vector<16x128xf32>
    %46 = arith.select %44, %20, %45 : vector<16x128xi1>, vector<16x128xf32>
    %cst_22 = arith.constant dense<0xFF800000> : vector<128xf32>
    %47 = vector.multi_reduction <maximumf>, %46, %cst_22 [0] : vector<16x128xf32> to vector<128xf32>
    %48 = vector.shape_cast %47 : vector<128xf32> to vector<1x128xf32>
    %49 = vector.broadcast %48 : vector<1x128xf32> to vector<16x128xf32>
    %50 = arith.subf %46, %49 : vector<16x128xf32>
    %51 = math.exp %50 : vector<16x128xf32>
    %cst_23 = arith.constant dense<0.000000e+00> : vector<128xf32>
    %52 = vector.multi_reduction <add>, %51, %cst_23 [0] : vector<16x128xf32> to vector<128xf32>
    %53 = vector.shape_cast %52 : vector<128xf32> to vector<1x128xf32>
    %54 = math.log %53 : vector<1x128xf32>
    %55 = arith.addf %48, %54 : vector<1x128xf32>
    %cst_24 = arith.constant 0.000000e+00 : f32
    %56 = vector.broadcast %cst_24 : f32 to vector<16x1xf32>
    %cst_25 = arith.constant 0.000000e+00 : f32
    %57 = vector.broadcast %cst_25 : f32 to vector<16x1xf32>
    %58 = arith.subf %57, %15 : vector<16x1xf32>
    %59 = arith.maximumf %56, %58 : vector<16x1xf32>
    %60 = arith.subf %56, %58 : vector<16x1xf32>
    %61 = arith.cmpf one, %60, %60 : vector<16x1xf32>
    %62 = arith.addf %56, %58 : vector<16x1xf32>
    %63 = math.absf %60 : vector<16x1xf32>
    %cst_26 = arith.constant 0.000000e+00 : f32
    %64 = vector.broadcast %cst_26 : f32 to vector<16x1xf32>
    %65 = arith.subf %64, %63 : vector<16x1xf32>
    %66 = math.exp %65 : vector<16x1xf32>
    %67 = math.log1p %66 : vector<16x1xf32>
    %68 = arith.addf %59, %67 : vector<16x1xf32>
    %69 = arith.select %61, %62, %68 : vector<16x1xi1>, vector<16x1xf32>
    %cst_27 = arith.constant 0.000000e+00 : f32
    %70 = vector.broadcast %cst_27 : f32 to vector<16x1xf32>
    %71 = arith.subf %70, %69 : vector<16x1xf32>
    %72 = arith.subf %71, %15 : vector<16x1xf32>
    %cst_28 = arith.constant 0.000000e+00 : f32
    %73 = vector.broadcast %cst_28 : f32 to vector<1x128xf32>
    %cst_29 = arith.constant 0.000000e+00 : f32
    %74 = vector.broadcast %cst_29 : f32 to vector<1x128xf32>
    %75 = arith.subf %74, %19 : vector<1x128xf32>
    %76 = arith.maximumf %73, %75 : vector<1x128xf32>
    %77 = arith.subf %73, %75 : vector<1x128xf32>
    %78 = arith.cmpf one, %77, %77 : vector<1x128xf32>
    %79 = arith.addf %73, %75 : vector<1x128xf32>
    %80 = math.absf %77 : vector<1x128xf32>
    %cst_30 = arith.constant 0.000000e+00 : f32
    %81 = vector.broadcast %cst_30 : f32 to vector<1x128xf32>
    %82 = arith.subf %81, %80 : vector<1x128xf32>
    %83 = math.exp %82 : vector<1x128xf32>
    %84 = math.log1p %83 : vector<1x128xf32>
    %85 = arith.addf %76, %84 : vector<1x128xf32>
    %86 = arith.select %78, %79, %85 : vector<1x128xi1>, vector<1x128xf32>
    %cst_31 = arith.constant 0.000000e+00 : f32
    %87 = vector.broadcast %cst_31 : f32 to vector<1x128xf32>
    %88 = arith.subf %87, %86 : vector<1x128xf32>
    %89 = arith.subf %88, %19 : vector<1x128xf32>
    %90 = vector.broadcast %42 : vector<16x1xf32> to vector<16x128xf32>
    %91 = arith.subf %20, %90 : vector<16x128xf32>
    %92 = vector.broadcast %55 : vector<1x128xf32> to vector<16x128xf32>
    %93 = arith.subf %20, %92 : vector<16x128xf32>
    %94 = arith.addf %91, %93 : vector<16x128xf32>
    %95 = vector.broadcast %71 : vector<16x1xf32> to vector<16x128xf32>
    %96 = vector.broadcast %88 : vector<1x128xf32> to vector<16x128xf32>
    %97 = arith.addf %95, %96 : vector<16x128xf32>
    %98 = arith.addf %94, %97 : vector<16x128xf32>
    %c8_i32_32 = arith.constant 8 : i32
    %99 = vector.broadcast %c8_i32_32 : i32 to vector<1x128xi32>
    %100 = arith.cmpi eq, %24, %99 : vector<1x128xi32>
    %c8_i32_33 = arith.constant 8 : i32
    %101 = vector.broadcast %c8_i32_33 : i32 to vector<16x1xi32>
    %102 = arith.cmpi eq, %25, %101 : vector<16x1xi32>
    %cst_34 = arith.constant 0.000000e+00 : f32
    %103 = vector.broadcast %cst_34 : f32 to vector<1x128xf32>
    %104 = arith.select %100, %103, %89 : vector<1x128xi1>, vector<1x128xf32>
    %105 = vector.shape_cast %100 : vector<1x128xi1> to vector<1x128xi1>
    %106 = vector.broadcast %105 : vector<1x128xi1> to vector<16x128xi1>
    %107 = vector.shape_cast %72 : vector<16x1xf32> to vector<16x1xf32>
    %108 = vector.broadcast %107 : vector<16x1xf32> to vector<16x128xf32>
    %109 = arith.select %106, %108, %98 : vector<16x128xi1>, vector<16x128xf32>
    %110 = vector.shape_cast %102 : vector<16x1xi1> to vector<16x1xi1>
    %111 = vector.broadcast %110 : vector<16x1xi1> to vector<16x128xi1>
    %112 = vector.shape_cast %104 : vector<1x128xf32> to vector<1x128xf32>
    %113 = vector.broadcast %112 : vector<1x128xf32> to vector<16x128xf32>
    %114 = arith.select %111, %113, %109 : vector<16x128xi1>, vector<16x128xf32>
    %c0_35 = arith.constant 0 : index
    %c0_36 = arith.constant 0 : index
    %c0_37 = arith.constant 0 : index
    %115 = vector.load %arg6[%c0_35, %c0_36, %c0_37] : memref<1x16x128xf32, #tpu.memory_space<vmem>>, vector<1x16x128xf32>
    %116 = vector.shape_cast %115 : vector<1x16x128xf32> to vector<16x128xf32>
    %117 = vector.shape_cast %114 : vector<16x128xf32> to vector<1x16x128xf32>
    tpu.vector_store %arg6[%c0_35, %c0_36, %c0_37], %117 {strides = array<i32>} : memref<1x16x128xf32, #tpu.memory_space<vmem>>, vector<1x16x128xf32>,
    %cst_38 = arith.constant 5.000000e-01 : f32
    %118 = vector.broadcast %cst_38 : f32 to vector<16x128xf32>
    %119 = arith.mulf %118, %114 : vector<16x128xf32>
    %120 = math.tanh %119 : vector<16x128xf32>
    %cst_39 = arith.constant 1.000000e+00 : f32
    %121 = vector.broadcast %cst_39 : f32 to vector<16x128xf32>
    %122 = arith.addf %120, %121 : vector<16x128xf32>
    %cst_40 = arith.constant 5.000000e-01 : f32
    %123 = vector.broadcast %cst_40 : f32 to vector<16x128xf32>
    %124 = arith.mulf %123, %122 : vector<16x128xf32>
    %c0_41 = arith.constant 0 : index
    %c0_42 = arith.constant 0 : index
    %c0_43 = arith.constant 0 : index
    %125 = vector.load %arg8[%c0_41, %c0_42, %c0_43] : memref<1x16x128xf32, #tpu.memory_space<vmem>>, vector<1x16x128xf32>
    %126 = vector.shape_cast %125 : vector<1x16x128xf32> to vector<16x128xf32>
    %127 = vector.shape_cast %124 : vector<16x128xf32> to vector<1x16x128xf32>
    tpu.vector_store %arg8[%c0_41, %c0_42, %c0_43], %127 {strides = array<i32>} : memref<1x16x128xf32, #tpu.memory_space<vmem>>, vector<1x16x128xf32>,
    return
  }
  func.func @transform_0(%arg0: i32) -> (i32, i32, i32) {
    %c0_i32 = arith.constant 0 : i32
    %c0_i32_0 = arith.constant 0 : i32
    %c0_i32_1 = arith.constant 0 : i32
    return %arg0, %c0_i32, %c0_i32_0 : i32, i32, i32
  }
  func.func @transform_1(%arg0: i32) -> (i32, i32, i32) {
    %c0_i32 = arith.constant 0 : i32
    %c0_i32_0 = arith.constant 0 : i32
    %c0_i32_1 = arith.constant 0 : i32
    return %arg0, %c0_i32, %c0_i32_0 : i32, i32, i32
  }
  func.func @transform_2(%arg0: i32) -> (i32, i32) {
    %c0_i32 = arith.constant 0 : i32
    %c0_i32_0 = arith.constant 0 : i32
    %c0_i32_1 = arith.constant 0 : i32
    return %c0_i32, %c0_i32_0 : i32, i32
  }
  func.func @transform_3(%arg0: i32) -> (i32, i32) {
    %c0_i32 = arith.constant 0 : i32
    %c0_i32_0 = arith.constant 0 : i32
    %c0_i32_1 = arith.constant 0 : i32
    return %c0_i32, %c0_i32_0 : i32, i32
  }
  func.func @transform_4(%arg0: i32) -> (i32, i32) {
    %c0_i32 = arith.constant 0 : i32
    %c0_i32_0 = arith.constant 0 : i32
    %c0_i32_1 = arith.constant 0 : i32
    return %c0_i32, %c0_i32_0 : i32, i32
  }
  func.func @transform_5(%arg0: i32) -> (i32, i32, i32) {
    %c0_i32 = arith.constant 0 : i32
    %c0_i32_0 = arith.constant 0 : i32
    %c0_i32_1 = arith.constant 0 : i32
    return %arg0, %c0_i32, %c0_i32_0 : i32, i32, i32
  }
  func.func @transform_6(%arg0: i32) -> (i32, i32, i32) {
    %c0_i32 = arith.constant 0 : i32
    %c0_i32_0 = arith.constant 0 : i32
    %c0_i32_1 = arith.constant 0 : i32
    return %arg0, %c0_i32, %c0_i32_0 : i32, i32, i32
  }
  func.func @transform_7(%arg0: i32) -> (i32, i32, i32) {
    %c0_i32 = arith.constant 0 : i32
    %c0_i32_0 = arith.constant 0 : i32
    %c0_i32_1 = arith.constant 0 : i32
    return %arg0, %c0_i32, %c0_i32_0 : i32, i32, i32
  }
}

</mosaic_0001>

<bundles_post_ra>
// kernel: match_assignment.1
= control target key start
LH: loop header
LB: loop body
LE: loop exit
PB: predicated region body
PF: predicated region fallthrough
CT: control target
= control target key end

     0   :  { %s1606_s24 = smov 0   ;;  %s1810_s0 = inlined_call_operand.vmem [shape: f32[2,16,32], index: 0, kind: input, shape index: {}]   ;;  %s1811_s1 = inlined_call_operand.vmem [shape: f32[2,128,32], index: 1, kind: input, shape index: {}]   ;;  %s1812_s2 = inlined_call_operand.vmem [shape: f32[32,128], index: 2, kind: input, shape index: {}]   ;;  %s1813_s3 = inlined_call_operand.vmem [shape: f32[1,128], index: 3, kind: input, shape index: {}]   ;;  %s1814_s4 = inlined_call_operand.vmem [shape: f32[1,32], index: 4, kind: input, shape index: {}]   ;;  %s1815_s5 = inlined_call_operand.vmem [shape: f32[2,16,128], index: 5, kind: output, shape index: {0}]   ;;  %s1816_s6 = inlined_call_operand.vmem [shape: f32[2,16,128], index: 6, kind: output, shape index: {1}]   ;;  %s1817_s7 = inlined_call_operand.vmem [shape: f32[2,16,128], index: 7, kind: output, shape index: {2}]  }
   0x1 LB: > { %s1165_s25 = sadd.s32 4294967295, %s1560_s24   ;;  %p1169_p0 = scmp.ge.s32.totalorder %s1560_s24, 1  ;;  %s1560_s24 = sphi %s1606_s24, %s18_s24  }
   0x2   : > { %p252_p1 = scmp.lt.s32.totalorder %s1560_s24, 3 }
   0x4   : > { %p253_p2 = pnand %p1169_p0, %p252_p1 }
   0x5   : > { %v342_v0 = vld [vmem:[%s1812_s2] sm:$0xff] (!%p253_p2)  ;;  %v343_v1 = vld [vmem:[%s1812_s2 + $0x8] sm:$0xff] (!%p253_p2)  ;;  %v344_v2 = vld [vmem:[%s1812_s2 + $0x10] sm:$0xff] (!%p253_p2)  ;;  %p299_p3 = scmp.lt.s32.totalorder (!%p253_p2), %s1165_s25, 1  ;;  %vm354_vm0 = vcmask (!%p253_p2), 261120   ;;  %v1562_v11 = vmov (!%p253_p2), 0.0|0.0   ;;  %v349_v38 = vlaneseq (!%p253_p2) }
   0x6   : > { %256 = sbr.rel (%p253_p2) target bundleno = 855 (0x357), region = 40  ;;  %v1414_v3 = vpack.c.bf16 (!%p253_p2), %v343_v1, %v342_v0  ;;  %v345_v4 = vld [vmem:[%s1812_s2 + $0x18] sm:$0xff] (!%p253_p2)  ;;  %vm1563_vm1 = vmmov (!%p253_p2), 0   ;;  %v1564_v13 = vmov (!%p253_p2), 0.0   ;;  %vm1649_vm2 = vmpackc.low (!%p253_p2), %vm354_vm0, %vm354_vm0  ;;  %v347_v35 = vld [vmem:[%s1814_s4] sm:$0x1] (!%p253_p2) }
   0x7   : > { %v1418_v5 = vpack.c.bf16 (!%p253_p2), %v345_v4, %v344_v2  ;;  %v346_v36 = vld [vmem:[%s1813_s3] sm:$0x1] (!%p253_p2)  ;;  %v1565_v37 = vmov (!%p253_p2), 32   ;;  %v1701_v39 = vshrl.u32 (!%p253_p2), %v349_v38, 7 }
   0x8   : > { %1423 = vmatprep.subr.bf16.mxu1 (!%p253_p2), %v1414_v3  ;;  %1415 = vmatprep.subr.bf16.mxu0 (!%p253_p2), %v1414_v3 }
   0x9   : > { %1425 = vmatpush3.bf16.msra.mxu1 (!%p253_p2), %v1414_v3  ;;  %1417 = vmatpush3.bf16.msra.mxu0 (!%p253_p2), %v1414_v3  ;;  %v1704_v40 = vsub.s32 (!%p253_p2), 0, %v1701_v39 }
   0xa   : > { %1427 = vmatprep.subr.bf16.mxu1 (!%p253_p2), %v1418_v5  ;;  %1419 = vmatprep.subr.bf16.mxu0 (!%p253_p2), %v1418_v5 }
   0xb   : > { %1522 = vset.pattern.permute.xlu1 (!%p253_p2), %v1565_v37  ;;  %1523 = vset.pattern.permute.xlu0 (!%p253_p2), %v1565_v37  ;;  %v352_v41 = vrot.slane (!%p253_p2), %v346_v36, %v1704_v40 }
   0xc   : > { %630 = vperm.xlu1 (!%p253_p2), %1522, %v346_v36  }
   0xd   : > { %s1821_s25 = smov (!%p299_p3, %s1165_s25), 1  ;;  %1429 = vmatpush3.bf16.msra.mxu1 %v1418_v5  ;;  %1421 = vmatpush3.bf16.msra.mxu0 %v1418_v5 }
   0xe   : > { %s1236_s11 = sshll.u32 %s1821_s25, 7  ;;  %s1626_s12 = sshll.u32 %s1821_s25, 4  ;;  %1430 = vmatprep.subr.bf16.mxu0 %v1562_v11 }
   0xf   : > { %s1631_s15 = scalar_lea.vmem %s1811_s1, %s1236_s11  ;;  %s303_s18 = scalar_lea.vmem %s1810_s0, %s1626_s12 }
  0x10   : > { %v326_v6 = vld [vmem:[%s1631_s15] sm:$0xff]  ;;  %v327_v7 = vld [vmem:[%s1631_s15 + $0x8] sm:$0xff]  ;;  %v328_v10 = vld [vmem:[%s1631_s15 + $0x10] sm:$0xff]  ;;  %s318_s26 = scalar_lea.vmem %s1816_s6, %s1626_s12  ;;  %s313_s29 = scalar_lea.vmem %s1815_s5, %s1626_s12 }
  0x11   : > { %1320 = vmatprep.mubr.msk.f32.mxu1 %vm354_vm0, %v326_v6  ;;  %v324_v8 = vld [vmem:[%s303_s18] sm:$0xff]  ;;  %v325_v9 = vld [vmem:[%s303_s18 + $0x8] sm:$0xff]  ;;  %v329_v12 = vld [vmem:[%s1631_s15 + $0x18] sm:$0xff]  ;;  %v1431_v14 = vpack.c.bf16 %v327_v7, %v326_v6  ;;  %s323_s9 = scalar_lea.vmem %s1817_s7, %s1626_s12 }
  0x12   : > { %1309 = vmatprep.mubr.msk.f32.mxu0 %vm354_vm0, %v324_v8  ;;  %1321 = vmatmul.mubr.msk.f32.vlgmr.msra.gmra.mrb[0].mxu1 %vm354_vm0, %v327_v7  ;;  %v330_v15 = vld [vmem:[%s1631_s15 + $0x20] sm:$0xff]  ;;  %v331_v17 = vld [vmem:[%s1631_s15 + $0x28] sm:$0xff]  ;;  %v332_v18 = vld [vmem:[%s1631_s15 + $0x30] sm:$0xff]  ;;  %v1435_v20 = vpack.c.bf16 %v329_v12, %v328_v10 }
  0x13   : > { %1310 = vmatmul.mubr.msk.f32.vlgmr.msra.gmra.mrb[0].mxu0 %vm354_vm0, %v325_v9  ;;  %1323 = vmatprep.mubr.msk.f32.mxu1 %vm354_vm0, %v328_v10  ;;  %v333_v19 = vld [vmem:[%s1631_s15 + $0x38] sm:$0xff]  ;;  %v334_v21 = vld [vmem:[%s1631_s15 + $0x40] sm:$0xff]  ;;  %v335_v22 = vld [vmem:[%s1631_s15 + $0x48] sm:$0xff]  ;;  %v1439_v25 = vpack.c.bf16 %v331_v17, %v330_v15 }
  0x14   : > { %1376 = vmatprep.mubr.msk.f32.mxu0 %vm1563_vm1, %v1564_v13  ;;  %v336_v23 = vld [vmem:[%s1631_s15 + $0x50] sm:$0xff]  ;;  %v337_v24 = vld [vmem:[%s1631_s15 + $0x58] sm:$0xff]  ;;  %v338_v26 = vld [vmem:[%s1631_s15 + $0x60] sm:$0xff]  ;;  %v1443_v30 = vpack.c.bf16 %v333_v19, %v332_v18  ;;  %v1447_v31 = vpack.c.bf16 %v335_v22, %v334_v21 }
  0x15   : > { %v339_v27 = vld [vmem:[%s1631_s15 + $0x68] sm:$0xff]  ;;  %v340_v28 = vld [vmem:[%s1631_s15 + $0x70] sm:$0xff]  ;;  %v341_v29 = vld [vmem:[%s1631_s15 + $0x78] sm:$0xff]  ;;  %v1451_v32 = vpack.c.bf16 %v337_v24, %v336_v23 }
  0x16   : > { %1324 = vmatmul.mubr.msk.f32.gmra.mrb[2].mxu1 %vm354_vm0, %v329_v12  ;;  %1433 = vmatpush3.bf16.xpose.msk.msra.mxu0 %vm1649_vm2, %v1431_v14  ;;  %v1455_v33 = vpack.c.bf16 %v339_v27, %v338_v26  ;;  %v1459_v34 = vpack.c.bf16 %v341_v29, %v340_v28 }
  0x17   : > { %1326 = vmatprep.mubr.msk.f32.mxu1 %vm354_vm0, %v330_v15  ;;  %1434 = vmatprep.subr.bf16.mxu0 %v1562_v11 }
  0x1a   : > { %1327 = vmatmul.mubr.msk.f32.gmra.mrb[4].mxu1 %vm354_vm0, %v331_v17 }
  0x1b   : > { %1329 = vmatprep.mubr.msk.f32.mxu1 %vm354_vm0, %v332_v18 }
  0x1e   : > { %1330 = vmatmul.mubr.msk.f32.gmra.mrb[6].mxu1 %vm354_vm0, %v333_v19  ;;  %1437 = vmatpush3.bf16.xpose.msk.msra.mxu0 %vm1649_vm2, %v1435_v20 }
  0x1f   : > { %1332 = vmatprep.mubr.msk.f32.mxu1 %vm354_vm0, %v334_v21  ;;  %1438 = vmatprep.subr.bf16.mxu0 %v1562_v11 }
  0x22   : > { %1333 = vmatmul.mubr.msk.f32.gmra.mrb[8].mxu1 %vm354_vm0, %v335_v22 }
  0x23   : > { %1335 = vmatprep.mubr.msk.f32.mxu1 %vm354_vm0, %v336_v23 }
  0x26   : > { %1336 = vmatmul.mubr.msk.f32.gmra.mrb[10].mxu1 %vm354_vm0, %v337_v24  ;;  %1441 = vmatpush3.bf16.xpose.msk.msra.mxu0 %vm1649_vm2, %v1439_v25 }
  0x27   : > { %1338 = vmatprep.mubr.msk.f32.mxu1 %vm354_vm0, %v338_v26  ;;  %1442 = vmatprep.subr.bf16.mxu0 %v1562_v11 }
  0x2a   : > { %1339 = vmatmul.mubr.msk.f32.gmra.mrb[12].mxu1 %vm354_vm0, %v339_v27 }
  0x2b   : > { %1341 = vmatprep.mubr.msk.f32.mxu1 %vm354_vm0, %v340_v28 }
  0x2e   : > { %1342 = vmatmul.mubr.msk.f32.gmra.mrb[14].mxu1 %vm354_vm0, %v341_v29  ;;  %1445 = vmatpush3.bf16.xpose.msk.msra.mxu0 %vm1649_vm2, %v1443_v30 }
  0x2f   : > { %1446 = vmatprep.subr.bf16.mxu0 %v1562_v11 }
  0x36   : > { %1449 = vmatpush3.bf16.xpose.msk.msra.mxu0 %vm1649_vm2, %v1447_v31 }
  0x37   : > { %1450 = vmatprep.subr.bf16.mxu0 %v1562_v11 }
  0x3e   : > { %1453 = vmatpush3.bf16.xpose.msk.msra.mxu0 %vm1649_vm2, %v1451_v32 }
  0x3f   : > { %1454 = vmatprep.subr.bf16.mxu0 %v1562_v11 }
  0x46   : > { %1457 = vmatpush3.bf16.xpose.msk.msra.mxu0 %vm1649_vm2, %v1455_v33 }
  0x47   : > { %1458 = vmatprep.subr.bf16.mxu0 %v1562_v11 }
  0x4e   : > { %1461 = vmatpush3.bf16.xpose.msk.msra.mxu0 %vm1649_vm2, %v1459_v34 }
  0x55   : > { %1377 = vmatmul.mubr.msk.f32.vlgmr.msra.gmra.mrb[2].mxu0 %vm354_vm0, %v347_v35 }
  0xe5   : > { %v1322_v42 = vpop.f32.mrb[0].mxu1 }
  0xe6   : > { %v1311_v43 = vpop.f32.mrb[0].mxu0  ;;  %v556_v44 = vadd.f32 %v1322_v42, %v352_v41  ;;  %v550_v45 = vpop.f32.mrb[1].mxu1 }
  0xe7   : > { %v1707_v46 = vadd.f32 %v1311_v43, %v352_v41  ;;  %v427_v47 = vpop.f32.mrb[1].mxu0  ;;  %v551_v48 = vadd.f32 %v550_v45, %v352_v41 }
  0xe8   : > { %v1709_v49 = vadd.f32 %v427_v47, %v352_v41 }
  0xe9   : > { %v1462_v50 = vpack.c.bf16 %v556_v44, %v551_v48  ;;  %v1325_v51 = vpop.f32.mrb[2].mxu1  ;;  %v903_v48 = vsub.f32 0.0, %v1707_v46 }
  0xea   : > { %v1712_v52 = vsub.f32 0.0, %v1709_v49  ;;  %1411 = vmatprep.mubr.msk.f32.mxu1 %vm354_vm0, %v1709_v49  ;;  %v566_v53 = vadd.f32 %v1325_v51, %v352_v41  ;;  %v560_v54 = vpop.f32.mrb[3].mxu1 }
  0xeb   : > { %1464 = vmatprep.subr.msk.bf16.mxu1 %vm1649_vm2, %v1462_v50  ;;  %v561_v55 = vadd.f32 %v560_v54, %v352_v41  ;;  %v1760_v54 = vand.u32 127, %v349_v38 }
  0xec   : > { %v906_v56 = vsub.f32 0.0, %v1712_v52  ;;  %1467 = vmatpush3.bf16.xpose.msk.msra.mxu1 %vm1649_vm2, %v1462_v50  ;;  %v904_v35 = vmax.f32 %v1712_v52, 0.0 }
  0xed   : > { %v1468_v57 = vpack.c.bf16 %v566_v53, %v561_v55  ;;  %v1328_v58 = vpop.f32.mrb[4].mxu1  ;;  %vm846_vm5 = vcmp.lt.s32.totalorder %v1760_v54, 8  ;;  %vm992_vm10 = vcmp.eq.s32.totalorder %v1760_v54, 8 }
  0xee   : > { %v912_v59 = vand.u32 2147483647, %v906_v56  ;;  %v576_v60 = vadd.f32 %v1328_v58, %v352_v41  ;;  %v570_v61 = vpop.f32.mrb[5].mxu1  ;;  %vm908_vm4 = vcmp.ne.f32.partialorder %v906_v56, %v906_v56 }
  0xef   : > { %1470 = vmatprep.subr.msk.bf16.mxu1 %vm1649_vm2, %v1468_v57  ;;  %v571_v62 = vadd.f32 %v570_v61, %v352_v41 }
  0xf0   : > { %v914_v63 = vsub.f32 0.0, %v912_v59 }
  0xf1   : > { %v1474_v0 = vpack.c.bf16 %v576_v60, %v571_v62  ;;  %v1331_v1 = vpop.f32.mrb[6].mxu1 }
  0xf2   : > { %v916_v2 = vmul.f32 1.442695, %v914_v63  ;;  %v586_v3 = vadd.f32 %v1331_v1, %v352_v41  ;;  %v580_v4 = vpop.f32.mrb[7].mxu1 }
  0xf3   : > { %v581_v5 = vadd.f32 %v580_v4, %v352_v41 }
  0xf4   : > { %1524 = vpow2.f32 %v916_v2  ;;  %1473 = vmatpush3.bf16.xpose.msk.msra.mxu1 %vm1649_vm2, %v1468_v57 }
  0xf5   : > { %1476 = vmatprep.subr.msk.bf16.mxu1 %vm1649_vm2, %v1474_v0  ;;  %v1480_v6 = vpack.c.bf16 %v586_v3, %v581_v5  ;;  %v1334_v7 = vpop.f32.mrb[8].mxu1 }
  0xf6   : > { %v596_v8 = vadd.f32 %v1334_v7, %v352_v41  ;;  %v590_v9 = vpop.f32.mrb[9].mxu1  ;;  %v905_v7 = vmax.f32 %v903_v48, 0.0 }
  0xf7   : > { %v591_v10 = vadd.f32 %v590_v9, %v352_v41 }
  0xf9   : > { %v1486_v11 = vpack.c.bf16 %v596_v8, %v591_v10  ;;  %v1337_v12 = vpop.f32.mrb[10].mxu1 }
  0xfa   : > { %v606_v13 = vadd.f32 %v1337_v12, %v352_v41  ;;  %v600_v14 = vpop.f32.mrb[11].mxu1 }
  0xfb   : > { %v601_v15 = vadd.f32 %v600_v14, %v352_v41 }
  0xfc   : > { %1479 = vmatpush3.bf16.xpose.msk.msra.mxu1 %vm1649_vm2, %v1474_v0 }
  0xfd   : > { %1482 = vmatprep.subr.msk.bf16.mxu1 %vm1649_vm2, %v1480_v6  ;;  %v1492_v18 = vpack.c.bf16 %v606_v13, %v601_v15  ;;  %v1340_v19 = vpop.f32.mrb[12].mxu1 }
  0xfe   : > { %v1525_v17 = vpop.eup %1524  ;;  %v616_v20 = vadd.f32 %v1340_v19, %v352_v41  ;;  %v610_v21 = vpop.f32.mrb[13].mxu1 }
  0xff   : > { %v920_v22 = vadd.f32 1.0, %v1525_v17  ;;  %v611_v23 = vadd.f32 %v610_v21, %v352_v41  ;;  %v923_v26 = vmul.f32 -0.5, %v1525_v17  ;;  %v926_v32 = vand.u32 2147483647, %v1525_v17 }
 0x101   : > { %1526 = vlog2.f32 %v920_v22  ;;  %v1498_v24 = vpack.c.bf16 %v616_v20, %v611_v23  ;;  %v1343_v25 = vpop.f32.mrb[14].mxu1  ;;  %v924_v31 = vadd.f32 1.0, %v923_v26  ;;  %vm927_vm3 = vcmp.lt.f32.partialorder %v926_v32, 0.0004427343 }
 0x102   : > { %v626_v27 = vadd.f32 %v1343_v25, %v352_v41  ;;  %v620_v28 = vpop.f32.mrb[15].mxu1 }
 0x103   : > { %v621_v29 = vadd.f32 %v620_v28, %v352_v41  ;;  %v925_v33 = vmul.f32 %v1525_v17, %v924_v31 }
 0x104   : > { %1485 = vmatpush3.bf16.xpose.msk.msra.mxu1 %vm1649_vm2, %v1480_v6 }
 0x105   : > { %1488 = vmatprep.subr.msk.bf16.mxu1 %vm1649_vm2, %v1486_v11  ;;  %v1504_v30 = vpack.c.bf16 %v626_v27, %v621_v29 }
 0x10b   : > { %v1527_v34 = vpop.eup %1526 }
 0x10c   : > { %v922_v36 = vmul.f32 0.6931472, %v1527_v34  ;;  %1491 = vmatpush3.bf16.xpose.msk.msra.mxu1 %vm1649_vm2, %v1486_v11 }
 0x10d   : > { %1494 = vmatprep.subr.msk.bf16.mxu1 %vm1649_vm2, %v1492_v18 }
 0x10e   : > { %v928_v37 = vsel %vm927_vm3, %v925_v33, %v922_v36 }
 0x10f   : > { %v938_v41 = vadd.f32 %v928_v37, %v904_v35 }
 0x111   : > { %v940_v42 = vsel %vm908_vm4, %v1712_v52, %v938_v41 }
 0x112   : > { %v942_v43 = vsub.f32 0.0, %v940_v42  ;;  %v631_v42 = vpop.permute.xlu1 %630 }
 0x114   : > { %976 = vperm.xlu1 %1522, %v942_v43   ;;  %v1742_v44 = vsub.f32 %v942_v43, %v1709_v49  ;;  %1497 = vmatpush3.bf16.xpose.msk.msra.mxu1 %vm1649_vm2, %v1492_v18  ;;  %v907_v49 = vsub.f32 0.0, %v903_v48  ;;  %v636_v43 = vrot.slane %v631_v42, %v1704_v40 }
 0x115   : > { %1500 = vmatprep.subr.msk.bf16.mxu1 %vm1649_vm2, %v1498_v24 }
 0x116   : > { %v913_v50 = vand.u32 2147483647, %v907_v49  ;;  %vm909_vm7 = vcmp.ne.f32.partialorder %v907_v49, %v907_v49 }
 0x118   : > { %v915_v51 = vsub.f32 0.0, %v913_v50 }
 0x11a   : > { %v918_v52 = vmul.f32 1.442695, %v915_v51 }
 0x11c   : > { %1503 = vmatpush3.bf16.xpose.msk.msra.mxu1 %vm1649_vm2, %v1498_v24  ;;  %1528 = vpow2.f32 %v918_v52 }
 0x11d   : > { %1506 = vmatprep.subr.msk.bf16.mxu1 %vm1649_vm2, %v1504_v30 }
 0x124   : > { %1509 = vmatpush3.bf16.xpose.msk.msra.mxu1 %vm1649_vm2, %v1504_v30 }
 0x126   : > { %v1529_v53 = vpop.eup %1528 }
 0x127   : > { %v929_v55 = vadd.f32 1.0, %v1529_v53  ;;  %v932_v59 = vmul.f32 -0.5, %v1529_v53  ;;  %v935_v1 = vand.u32 2147483647, %v1529_v53 }
 0x128   : > { %v1754_v45 = vpop.f32.mrb[2].mxu0 }
 0x129   : > { %v1378_v47 = vpop.f32.mrb[3].mxu0  ;;  %1530 = vlog2.f32 %v929_v55  ;;  %v933_v63 = vadd.f32 1.0, %v932_v59  ;;  %vm936_vm6 = vcmp.lt.f32.partialorder %v935_v1, 0.0004427343 }
 0x12a   : > { %v707_v47 = vadd.f32 %v1754_v45, %v636_v43 }
 0x12b   : > { %1412 = vmatmul.mubr.msk.f32.vlgmr.msra.gmra.mrb[16].mxu1 %vm354_vm0, %v1707_v46  ;;  %v934_v5 = vmul.f32 %v1529_v53, %v933_v63 }
 0x133   : > { %v1531_v0 = vpop.eup %1530 }
 0x134   : > { %v931_v4 = vmul.f32 0.6931472, %v1531_v0 }
 0x136   : > { %v937_v10 = vsel %vm936_vm6, %v934_v5, %v931_v4 }
 0x137   : > { %v939_v13 = vadd.f32 %v937_v10, %v905_v7 }
 0x139   : > { %v941_v14 = vsel %vm909_vm7, %v903_v48, %v939_v13  ;;  %v946_v48 = vsub.f32 0.0, %v707_v47 }
 0x13a   : > { %v943_v15 = vsub.f32 0.0, %v941_v14 }
 0x13b   : > { %v948_v49 = vsub.f32 0.0, %v946_v48  ;;  %v947_v45 = vmax.f32 %v946_v48, 0.0 }
 0x13c   : > { %v945_v41 = vsub.f32 %v943_v15, %v1707_v46 }
 0x13d   : > { %v951_v50 = vand.u32 2147483647, %v948_v49  ;;  %vm949_vm9 = vcmp.ne.f32.partialorder %v948_v49, %v948_v49 }
 0x13f   : > { %v952_v51 = vsub.f32 0.0, %v951_v50 }
 0x141   : > { %v953_v52 = vmul.f32 1.442695, %v952_v51 }
 0x193   : > { %v977_v46 = vpop.permute.xlu1 %976 }
 0x1fe   : > { %v1767_v16 = vpop.f32.mrb[16].mxu1 }
 0x1ff   : > { %840 = vst [vmem:[%s318_s26 + $0x8] sm:$0xff] %v1767_v16  ;;  %v1770_v56 = vpop.f32.mrb[17].mxu1  ;;  %v852_v57 = vsel %vm846_vm5, %v1767_v16, -1e+30 }
 0x200   : > { %839 = vst [vmem:[%s318_s26] sm:$0xff] %v1770_v56  ;;  %v879_v38 = vmax.f32 %v1770_v56, -1e+30  ;;  %855 = vmax.xlane.f32.xlu0 %v852_v57  ;;  %v851_v60 = vsel %vm846_vm5, %v1770_v56, -1e+30 }
 0x202   : > { %v880_v58 = vrot.slane %v879_v38, 4 }
 0x204   : > { %v881_v61 = vmax.f32 %v879_v38, %v880_v58  ;;  %853 = vmax.xlane.f32.xlu0 %v851_v60 }
 0x206   : > { %v882_v62 = vrot.slane %v881_v61, 2 }
 0x208   : > { %v883_v2 = vmax.f32 %v881_v61, %v882_v62 }
 0x20a   : > { %v884_v3 = vrot.slane %v883_v2, 1 }
 0x20c   : > { %v885_v6 = vmax.f32 %v883_v2, %v884_v3 }
 0x20e   : > { %v886_v8 = vsub.f32 %v1770_v56, %v885_v6  ;;  %v887_v9 = vsub.f32 -1e+30, %v885_v6 }
 0x210   : > { %v888_v11 = vmul.f32 1.442695, %v886_v8  ;;  %v890_v12 = vmul.f32 1.442695, %v887_v9 }
 0x212   : > { %1532 = vpow2.f32 %v888_v11 }
 0x213   : > { %1534 = vpow2.f32 %v890_v12  ;;  %v845_v12 = vadd.s32 8, %v1701_v39 }
 0x215   : > { %vm994_vm11 = vcmp.eq.s32.totalorder %v845_v12, 8 }
 0x21a   : > { %981 = vperm.xlu0 %1523, %v943_v15  }
 0x21c   : > { %v1533_v17 = vpop.eup %1532 }
 0x21d   : > { %v1535_v18 = vpop.eup %1534 }
 0x21e   : > { %v892_v19 = vadd.f32 %v1535_v18, %v1533_v17 }
 0x220   : > { %v893_v20 = vrot.slane %v892_v19, 4 }
 0x222   : > { %v894_v21 = vadd.f32 %v893_v20, %v892_v19 }
 0x224   : > { %v895_v22 = vrot.slane %v894_v21, 2 }
 0x226   : > { %v896_v23 = vadd.f32 %v895_v22, %v894_v21 }
 0x228   : > { %v897_v24 = vrot.slane %v896_v23, 1 }
 0x22a   : > { %v898_v25 = vadd.f32 %v897_v24, %v896_v23 }
 0x22c   : > { %1536 = vlog2.f32 %v898_v25 }
 0x236   : > { %v1537_v26 = vpop.eup %1536 }
 0x237   : > { %v900_v27 = vmul.f32 0.6931472, %v1537_v26 }
 0x239   : > { %v1777_v28 = vadd.f32 %v900_v27, %v885_v6 }
 0x23b   : > { %v971_v29 = vsub.f32 %v1767_v16, %v1777_v28  ;;  %v970_v18 = vsub.f32 %v1770_v56, %v1777_v28 }
 0x28d   : > { %v856_v30 = vpop.xlane.xlu0 %855 }
 0x28e   : > { %v858_v31 = vsub.f32 %v852_v57, %v856_v30 }
 0x290   : > { %v861_v32 = vmul.f32 1.442695, %v858_v31 }
 0x291   : > { %v854_v33 = vpop.xlane.xlu0 %853 }
 0x292   : > { %1538 = vpow2.f32 %v861_v32  ;;  %v857_v34 = vsub.f32 %v851_v60, %v854_v33 }
 0x294   : > { %v859_v35 = vmul.f32 1.442695, %v857_v34 }
 0x296   : > { %1540 = vpow2.f32 %v859_v35 }
 0x297   : > { %1542 = vpow2.f32 %v953_v52 }
 0x299   : > { %v982_v61 = vpop.permute.xlu0 %981 }
 0x29c   : > { %v1539_v36 = vpop.eup %1538 }
 0x29d   : > { %865 = vadd.xlane.f32.xlu1 %v1539_v36 }
 0x2a0   : > { %v1541_v37 = vpop.eup %1540 }
 0x2a1   : > { %863 = vadd.xlane.f32.xlu0 %v1541_v37  ;;  %v1543_v53 = vpop.eup %1542 }
 0x2a2   : > { %v955_v55 = vadd.f32 1.0, %v1543_v53  ;;  %v958_v57 = vmul.f32 -0.5, %v1543_v53  ;;  %v961_v58 = vand.u32 2147483647, %v1543_v53 }
 0x2a4   : > { %1544 = vlog2.f32 %v955_v55  ;;  %v959_v38 = vadd.f32 1.0, %v958_v57  ;;  %vm962_vm8 = vcmp.lt.f32.partialorder %v961_v58, 0.0004427343 }
 0x2a6   : > { %v960_v60 = vmul.f32 %v1543_v53, %v959_v38 }
 0x2ae   : > { %1000 = vperm.xlu1 %1522, %v1742_v44   ;;  %v1545_v44 = vpop.eup %1544 }
 0x2af   : > { %v957_v59 = vmul.f32 0.6931472, %v1545_v44 }
 0x2b1   : > { %v963_v63 = vsel %vm962_vm8, %v960_v60, %v957_v59 }
 0x2b2   : > { %v964_v1 = vadd.f32 %v963_v63, %v947_v45 }
 0x2b4   : > { %v965_v2 = vsel %vm949_vm9, %v946_v48, %v964_v1 }
 0x2b5   : > { %v966_v4 = vsub.f32 0.0, %v965_v2 }
 0x2b7   : > { %1005 = vperm.xlu0 %1523, %v945_v41   ;;  %v967_v6 = vsub.f32 %v966_v4, %v707_v47  ;;  %v987_v9 = vrot.slane %v966_v4, %v1704_v40 }
 0x2b9   : > { %v989_v13 = vadd.f32 %v987_v9, %v982_v61  ;;  %v995_v17 = vsel %vm992_vm10, 0.0, %v967_v6  ;;  %v988_v21 = vadd.f32 %v987_v9, %v977_v46 }
 0x32a   : > { %v866_v62 = vpop.xlane.xlu1 %865 }
 0x32b   : > { %1546 = vlog2.f32 %v866_v62 }
 0x32e   : > { %v864_v0 = vpop.xlane.xlu0 %863 }
 0x32f   : > { %1548 = vlog2.f32 %v864_v0 }
 0x335   : > { %v1547_v3 = vpop.eup %1546 }
 0x336   : > { %v870_v5 = vmul.f32 0.6931472, %v1547_v3  ;;  %v1006_v39 = vpop.permute.xlu0 %1005 }
 0x338   : > { %v872_v7 = vadd.f32 %v870_v5, %v856_v30 }
 0x339   : > { %v1549_v8 = vpop.eup %1548 }
 0x33a   : > { %v969_v10 = vsub.f32 %v1767_v16, %v872_v7  ;;  %v868_v11 = vmul.f32 0.6931472, %v1549_v8  ;;  %v1017_v16 = vrot.slane %v995_v17, %v1704_v40 }
 0x33c   : > { %v871_v14 = vadd.f32 %v868_v11, %v854_v33  ;;  %v973_v15 = vadd.f32 %v971_v29, %v969_v10 }
 0x33e   : > { %v968_v19 = vsub.f32 %v1770_v56, %v871_v14  ;;  %v991_v20 = vadd.f32 %v989_v13, %v973_v15  ;;  %v1001_v56 = vpop.permute.xlu1 %1000 }
 0x340   : > { %v972_v22 = vadd.f32 %v970_v18, %v968_v19  ;;  %v1009_v23 = vsel %vm992_vm10, %v1006_v39, %v991_v20 }
 0x341   : > { %v1019_v24 = vsel %vm994_vm11, %v1017_v16, %v1009_v23 }
 0x342   : > { %v990_v25 = vadd.f32 %v988_v21, %v972_v22  ;;  %1021 = vst [vmem:[%s313_s29 + $0x8] sm:$0xff] %v1019_v24  ;;  %v1023_v26 = vmul.f32 0.5, %v1019_v24 }
 0x344   : > { %v1008_v27 = vsel %vm992_vm10, %v1001_v56, %v990_v25  ;;  %1550 = vtanh.f32 %v1023_v26 }
 0x345   : > { %1020 = vst [vmem:[%s313_s29] sm:$0xff] %v1008_v27  ;;  %v1022_v28 = vmul.f32 0.5, %v1008_v27 }
 0x347   : > { %1552 = vtanh.f32 %v1022_v28 }
 0x34e   : > { %v1551_v40 = vpop.eup %1550 }
 0x34f   : > { %v1027_v29 = vadd.f32 1.0, %v1551_v40 }
 0x351   : > { %v1553_v30 = vpop.eup %1552  ;;  %v1029_v31 = vmul.f32 0.5, %v1027_v29 }
 0x352   : > { %v1026_v32 = vadd.f32 1.0, %v1553_v30 }
 0x353   : > { %1031 = vst [vmem:[%s323_s9 + $0x8] sm:$0xff] %v1029_v31 }
 0x354   : > { %v1028_v33 = vmul.f32 0.5, %v1026_v32 }
 0x356   : > { %1030 = vst [vmem:[%s323_s9] sm:$0xff] %v1028_v33 }
 0x357 PF: > { %s18_s24 = sadd.s32 1, %s1560_s24  }
 0x358   : > { %p15_p4 = scmp.ge.s32.totalorder %s18_s24, 4  }
 0x35a   :  { %17 = sbr.rel (!%p15_p4) target bundleno = 1 (0x1), region = 97 }

</bundles_post_ra>
